<compile_context>
chip_gen: v7x
topology: tpu7x:2x2x1
jax: 0.10.0
libtpu: 0.0.40
codegen_flags: <defaults>
</compile_context>

<pallas_src>
import math

import jax
import jax.numpy as jnp
from jax.experimental import pallas as pl
from jax.experimental.pallas import tpu as pltpu


def _sa_attn_kernel(x_ref, wqv_ref, bv_ref, wt_ref, bt_ref, t_ref, stats_ref):
    bt_tile, c, _ = x_ref.shape
    wqv = wqv_ref[...]                      # (2C, C) bf16 (pre-cast in wrapper)
    wt = wt_ref[...]                        # (C, C)  bf16
    bv = bv_ref[...]                        # (C, 1)  f32
    btb = bt_ref[...]                       # (C, 1)  f32

    # Short static unroll over the Bt batches in this block (amortizes the
    # per-grid-step overhead; each iteration is an independent batch).
    for i in range(bt_tile):
        xb = x_ref[i]                                      # (C, N) f32
        xb16 = xb.astype(jnp.bfloat16)

        # Stacked q/v projection: one bf16 MXU matmul with 2C output rows.
        qv = jnp.dot(wqv, xb16, preferred_element_type=jnp.float32)   # (2C, N)
        q = qv[:c]                                          # (C, N) f32
        v = qv[c:] + bv                                     # (C, N) f32

        # energy = (Wq x)^T (Wq x): contract the channel axis of q against
        # itself (no XLU transpose); bf16 operands, f32 accumulation.
        q16 = q.astype(jnp.bfloat16)
        energy = jax.lax.dot_general(
            q16, q16, dimension_numbers=(((0,), (0,)), ((), ())),
            preferred_element_type=jnp.float32)             # (N, N)

        # softmax over the last dim (max-shifted, matches nn.Softmax(dim=-1));
        # divides go to the EUP as approx reciprocals.
        e = jnp.exp(energy - jnp.max(energy, axis=-1, keepdims=True))
        attn = e * pl.reciprocal(jnp.sum(e, axis=-1, keepdims=True),
                                 approx=True)
        # extra column normalization: attn / (1e-9 + attn.sum(dim=1)); dim=1
        # of the (B, N, N) attention is axis 0 of this per-batch (N, N) slab.
        attn = attn * pl.reciprocal(
            1e-9 + jnp.sum(attn, axis=0, keepdims=True), approx=True)

        # x_r = x_v @ attn and trans_conv on (x - x_r): bf16 MXU, f32 acc.
        x_r = jnp.dot(v.astype(jnp.bfloat16), attn.astype(jnp.bfloat16),
                      preferred_element_type=jnp.float32)   # (C, N)
        d16 = (xb - x_r).astype(jnp.bfloat16)
        t = jnp.dot(wt, d16, preferred_element_type=jnp.float32) + btb  # (C,N)

        # t goes out in bf16 (halves the inter-kernel HBM traffic); the BN
        # partial stats are taken from the f32 value while it is still in
        # vregs and stored lane-dense as a (2, C) row pair (C on lanes).
        t_ref[i] = t.astype(jnp.bfloat16)
        stats_ref[i] = jnp.stack(
            [jnp.sum(t, axis=-1), jnp.sum(t * t, axis=-1)], axis=0)     # (2,C)


def _bn_relu_residual_kernel(x_ref, t_ref, scale_ref, shift_ref, o_ref):
    # gamma*(t-mean)*rsqrt(var+eps)+beta pre-folded into per-channel
    # scale/shift; then ReLU and residual add.  Purely elementwise.
    y = t_ref[...].astype(jnp.float32) * scale_ref[...] + shift_ref[...]
    o_ref[...] = x_ref[...] + jnp.maximum(y, 0.0)


def _vmem_physical_bytes():
    # Generation-aware physical VMEM (v5e/v6e: 128 MiB, v7x: 64 MiB per TC).
    try:
        return int(pltpu.get_tpu_info().vmem_capacity_bytes)
    except Exception:
        return 64 * 1024 * 1024          # conservative (v7x-sized) fallback


def _vmem_limit(working_set_bytes, phys_bytes):
    # Only ever raise the default scoped budget; cap at 3/4 of physical
    # (48 MiB on v7x, ~96 MiB on v5e/v6e) to leave headroom.
    cap = (3 * phys_bytes) // 4
    return int(min(cap, max(32 * 1024 * 1024, 2 * working_set_bytes)))


def _attn_working_set(bt, c, n):
    # double-buffered x (f32) / t (bf16) / stats blocks + weights + the f32
    # (N, N) attention slab and a few (C, N) f32 temporaries.
    return (2 * bt * c * n * (4 + 2) + 2 * bt * 2 * c * 4
            + 2 * (3 * c * c * 2 + 2 * c * 4)
            + 2 * 4 * n * n + 6 * 4 * c * n)


def _pick_batch_tile_attn(b, c, n, vmem_cap):
    """Largest kernel-1 batch tile that fits the VMEM budget while keeping
    >= 2 'parallel' grid steps so both v7x TensorCores get work (v5e/v6e have
    a single TC and are unaffected)."""
    best = 1
    for bt in range(1, b + 1):
        if b % bt != 0:
            continue
        if b > 1 and b // bt < 2:
            continue
        if _attn_working_set(bt, c, n) <= vmem_cap // 2:
            best = bt
    return best


def _pick_batch_tile_bn(b, c, n, vmem_cap):
    """Largest batch tile for the elementwise BN/ReLU/residual kernel: pure
    memory traffic, so the biggest block that fits (at the demo shape: one
    block covering all of (B, C, N))."""
    best = 1
    for bt in range(1, b + 1):
        if b % bt != 0:
            continue
        if 2 * bt * c * n * (4 + 2 + 4) + 4 * c * 4 <= vmem_cap // 2:
            best = bt
    return best


def sa_layer(x, params):
    B, C, N = x.shape
    wq, wv, bv = params["wq"], params["wv"], params["bv"]
    wt, bt = params["wt"], params["bt"]
    gamma, beta = params["gamma"], params["beta"]

    phys = _vmem_physical_bytes()

    # Pre-stack the tied q weight with the v weight and pre-cast all matmul
    # weights to bf16 ONCE here (not per grid step inside the kernel).
    w_qv = jnp.concatenate([wq, wv], axis=0).astype(jnp.bfloat16)   # (2C, C)
    wt16 = wt.astype(jnp.bfloat16)                                  # (C, C)

    # ---- Kernel 1: fused attention + 1x1 convs + lane-dense BN stats. ----
    bt1 = _pick_batch_tile_attn(B, C, N, phys)
    ws1 = _attn_working_set(bt1, C, N)
    # NOTE: the full f32 (N, N) attention slab plus the double-buffered
    # (Bt, C, N) blocks must stay under the scoped budget: roughly N <~ 3k on
    # v7x (48 MiB cap) and ~2x that on v5e/v6e.  Beyond that the softmax +
    # column normalization must become a two-pass, column-tiled kernel (the
    # column normalization couples all rows, so a one-pass online softmax is
    # not enough).
    t, stats = pl.pallas_call(
        _sa_attn_kernel,
        out_shape=(
            jax.ShapeDtypeStruct((B, C, N), jnp.bfloat16),
            jax.ShapeDtypeStruct((B, 2, C), jnp.float32),
        ),
        grid=(B // bt1,),
        in_specs=[
            pl.BlockSpec((bt1, C, N), lambda b: (b, 0, 0)),
            pl.BlockSpec((2 * C, C), lambda b: (0, 0)),
            pl.BlockSpec((C, 1), lambda b: (0, 0)),
            pl.BlockSpec((C, C), lambda b: (0, 0)),
            pl.BlockSpec((C, 1), lambda b: (0, 0)),
        ],
        out_specs=[
            pl.BlockSpec((bt1, C, N), lambda b: (b, 0, 0)),
            pl.BlockSpec((bt1, 2, C), lambda b: (b, 0, 0)),
        ],
        compiler_params=pltpu.CompilerParams(
            dimension_semantics=("parallel",),
            vmem_limit_bytes=_vmem_limit(ws1, phys)),
    )(x, w_qv, bv, wt16, bt)

    # ---- Tiny cross-batch reduction of the lane-dense partial stats. ----
    # Train-mode BatchNorm1d: biased stats over (B, N) per channel, eps=1e-5,
    # folded into per-channel scale/shift so kernel 2 is purely elementwise.
    # E[t^2] - E[t]^2 in f32 is fine at these sizes; for very large B*N use
    # shifted / Welford-style merges instead.
    cnt = jnp.float32(B * N)
    mean = jnp.sum(stats[:, 0, :], axis=0) / cnt             # (C,)
    var = jnp.sum(stats[:, 1, :], axis=0) / cnt - mean * mean
    scale = gamma[0, :, 0] * jax.lax.rsqrt(var + 1e-5)       # (C,)
    shift = beta[0, :, 0] - mean * scale                     # (C,)

    # ---- Kernel 2: elementwise BN-apply + ReLU + residual. ----
    # Pure memory traffic -> largest batch blocks that fit; residual input is
    # aliased to the output buffer (a true in-place write when the caller
    # donates x, e.g. jax.jit(sa_layer, donate_argnums=0)).
    bt2 = _pick_batch_tile_bn(B, C, N, phys)
    ws2 = 2 * bt2 * C * N * (4 + 2 + 4) + 4 * C * 4
    out = pl.pallas_call(
        _bn_relu_residual_kernel,
        out_shape=jax.ShapeDtypeStruct((B, C, N), jnp.float32),
        grid=(B // bt2,),
        in_specs=[
            pl.BlockSpec((bt2, C, N), lambda b: (b, 0, 0)),
            pl.BlockSpec((bt2, C, N), lambda b: (b, 0, 0)),
            pl.BlockSpec((C, 1), lambda b: (0, 0)),
            pl.BlockSpec((C, 1), lambda b: (0, 0)),
        ],
        out_specs=pl.BlockSpec((bt2, C, N), lambda b: (b, 0, 0)),
        input_output_aliases={0: 0},
        compiler_params=pltpu.CompilerParams(
            dimension_semantics=("parallel",),
            vmem_limit_bytes=_vmem_limit(ws2, phys)),
    )(x, t, scale[:, None], shift[:, None])
    return out


def sa_layer_ref(x, params):
    """Pure-JAX f32 reference mirroring the PyTorch forward (train-mode BN)."""
    wq, wv, bv = params["wq"], params["wv"], params["bv"]
    wt, bt = params["wt"], params["bt"]
    gamma, beta = params["gamma"], params["beta"]
    xq = jnp.einsum("oc,bcn->bon", wq, x)               # q_conv(x) == k_conv(x)
    x_q = jnp.transpose(xq, (0, 2, 1))                  # B, N, C
    x_k = xq                                            # B, C, N
    x_v = jnp.einsum("oc,bcn->bon", wv, x) + bv[None]
    energy = jnp.einsum("bnc,bcm->bnm", x_q, x_k)
    attn = jax.nn.softmax(energy, axis=-1)
    attn = attn / (1e-9 + attn.sum(axis=1, keepdims=True))
    x_r = jnp.einsum("bcn,bnm->bcm", x_v, attn)
    t = jnp.einsum("oc,bcn->bon", wt, x - x_r) + bt[None]
    mean = jnp.mean(t, axis=(0, 2), keepdims=True)
    var = jnp.mean((t - mean) ** 2, axis=(0, 2), keepdims=True)
    y = gamma * (t - mean) * jax.lax.rsqrt(var + 1e-5) + beta
    return x + jnp.maximum(y, 0.0)


if __name__ == "__main__":
    # N=128 keeps every per-batch matmul output / store lane-dense (128 lanes).
    B, C, N = 2, 32, 128
    key = jax.random.PRNGKey(0)
    ks = jax.random.split(key, 8)
    s = 1.0 / math.sqrt(C)
    params = dict(
        wq=jax.random.normal(ks[0], (C, C), jnp.float32) * s,   # q/k weight (tied)
        wv=jax.random.normal(ks[1], (C, C), jnp.float32) * s,   # v_conv weight
        bv=jax.random.normal(ks[2], (C, 1), jnp.float32) * s,   # v_conv bias
        wt=jax.random.normal(ks[3], (C, C), jnp.float32) * s,   # trans_conv weight
        bt=jax.random.normal(ks[4], (C, 1), jnp.float32) * s,   # trans_conv bias
        gamma=1.0 + 0.1 * jax.random.normal(ks[5], (1, C, 1), jnp.float32),  # BN w
        beta=0.1 * jax.random.normal(ks[6], (1, C, 1), jnp.float32),         # BN b
    )
    x = jax.random.normal(ks[7], (B, C, N), jnp.float32)

    # Reference first (x's buffer is donated to the kernel call below).
    ref = jax.block_until_ready(sa_layer_ref(x, params))

    sa = jax.jit(sa_layer, donate_argnums=0)
    out = jax.block_until_ready(sa(x, params))

    assert out.shape == (B, C, N) and out.dtype == jnp.float32
    # Tolerance accounts for bf16 MXU operands (incl. the energy matmul), the
    # bf16 inter-kernel t, and EUP approx reciprocals vs the pure-f32
    # reference (typical max-abs error ~3-5e-2).
    err = float(jnp.max(jnp.abs(out - ref)))
    assert err < 1e-1, f"max abs err {err}"
    print("KERNEL_OK")
</pallas_src>

<mosaic_0001>
module attributes {stable_mosaic.version = 11 : i64} {
  func.func @_sa_attn_kernel(%arg0: i32, %arg1: memref<1x32x128xf32, #tpu.memory_space<vmem>>, %arg2: memref<64x32xbf16, #tpu.memory_space<vmem>>, %arg3: memref<32x1xf32, #tpu.memory_space<vmem>>, %arg4: memref<32x32xbf16, #tpu.memory_space<vmem>>, %arg5: memref<32x1xf32, #tpu.memory_space<vmem>>, %arg6: memref<1x32x128xbf16, #tpu.memory_space<vmem>>, %arg7: memref<1x2x32xf32, #tpu.memory_space<vmem>>) attributes {dimension_semantics = [#tpu.dimension_semantics<parallel>], iteration_bounds = array<i64: 2>, scalar_prefetch = 0 : i64, scratch_operands = 0 : i64, tpu.core_type = #tpu.core_type<tc>, window_params = [{transform_indices = @transform_0, window_bounds = array<i64: 1, 32, 128>}, {pipeline_mode = #tpu.pipeline_mode<synchronous>, transform_indices = @transform_1, window_bounds = array<i64: 64, 32>}, {pipeline_mode = #tpu.pipeline_mode<synchronous>, transform_indices = @transform_2, window_bounds = array<i64: 32, 1>}, {pipeline_mode = #tpu.pipeline_mode<synchronous>, transform_indices = @transform_3, window_bounds = array<i64: 32, 32>}, {pipeline_mode = #tpu.pipeline_mode<synchronous>, transform_indices = @transform_4, window_bounds = array<i64: 32, 1>}, {transform_indices = @transform_5, window_bounds = array<i64: 1, 32, 128>}, {transform_indices = @transform_6, window_bounds = array<i64: 1, 2, 32>}]} {
    %c0 = arith.constant 0 : index
    %c0_0 = arith.constant 0 : index
    %0 = vector.load %arg2[%c0, %c0_0] : memref<64x32xbf16, #tpu.memory_space<vmem>>, vector<64x32xbf16>
    %c0_1 = arith.constant 0 : index
    %c0_2 = arith.constant 0 : index
    %1 = vector.load %arg4[%c0_1, %c0_2] : memref<32x32xbf16, #tpu.memory_space<vmem>>, vector<32x32xbf16>
    %c0_3 = arith.constant 0 : index
    %c0_4 = arith.constant 0 : index
    %2 = vector.load %arg3[%c0_3, %c0_4] : memref<32x1xf32, #tpu.memory_space<vmem>>, vector<32x1xf32>
    %c0_5 = arith.constant 0 : index
    %c0_6 = arith.constant 0 : index
    %3 = vector.load %arg5[%c0_5, %c0_6] : memref<32x1xf32, #tpu.memory_space<vmem>>, vector<32x1xf32>
    %c0_7 = arith.constant 0 : index
    %c0_8 = arith.constant 0 : index
    %c0_9 = arith.constant 0 : index
    %4 = vector.load %arg1[%c0_7, %c0_8, %c0_9] : memref<1x32x128xf32, #tpu.memory_space<vmem>>, vector<1x32x128xf32>
    %5 = vector.shape_cast %4 : vector<1x32x128xf32> to vector<32x128xf32>
    %6 = arith.truncf %5 : vector<32x128xf32> to vector<32x128xbf16>
    %cst = arith.constant dense<0.000000e+00> : vector<64x128xf32>
    %7 = tpu.matmul %0, %6, %cst {dimension_numbers = #tpu.dot_dimension_numbers<[1], [0], [0], [1], [0, 0, 1, 1], [], []>} : vector<64x32xbf16>, vector<32x128xbf16>, vector<64x128xf32> -> vector<64x128xf32>
    %8 = vector.extract_strided_slice %7 {offsets = [0, 0], sizes = [32, 128], strides = [1, 1]} : vector<64x128xf32> to vector<32x128xf32>
    %9 = vector.extract_strided_slice %7 {offsets = [32, 0], sizes = [32, 128], strides = [1, 1]} : vector<64x128xf32> to vector<32x128xf32>
    %10 = vector.broadcast %2 : vector<32x1xf32> to vector<32x128xf32>
    %11 = arith.addf %9, %10 : vector<32x128xf32>
    %12 = arith.truncf %8 : vector<32x128xf32> to vector<32x128xbf16>
    %cst_10 = arith.constant dense<0.000000e+00> : vector<128x128xf32>
    %13 = tpu.matmul %12, %12, %cst_10 {dimension_numbers = #tpu.dot_dimension_numbers<[0], [0], [1], [1], [0, 1, 1, 1], [], []>} : vector<32x128xbf16>, vector<32x128xbf16>, vector<128x128xf32> -> vector<128x128xf32>
    %cst_11 = arith.constant dense<0xFF800000> : vector<128xf32>
    %14 = vector.multi_reduction <maximumf>, %13, %cst_11 [1] : vector<128x128xf32> to vector<128xf32>
    %15 = vector.shape_cast %14 : vector<128xf32> to vector<128x1xf32>
    %16 = vector.broadcast %15 : vector<128x1xf32> to vector<128x128xf32>
    %17 = arith.subf %13, %16 : vector<128x128xf32>
    %18 = math.exp %17 : vector<128x128xf32>
    %cst_12 = arith.constant dense<0.000000e+00> : vector<128xf32>
    %19 = vector.multi_reduction <add>, %18, %cst_12 [1] : vector<128x128xf32> to vector<128xf32>
    %20 = vector.shape_cast %19 : vector<128xf32> to vector<128x1xf32>
    %21 = tpu.reciprocal %20 {approx = true} : vector<128x1xf32> -> vector<128x1xf32>
    %22 = vector.broadcast %21 : vector<128x1xf32> to vector<128x128xf32>
    %23 = arith.mulf %18, %22 : vector<128x128xf32>
    %cst_13 = arith.constant dense<0.000000e+00> : vector<128xf32>
    %24 = vector.multi_reduction <add>, %23, %cst_13 [0] : vector<128x128xf32> to vector<128xf32>
    %25 = vector.shape_cast %24 : vector<128xf32> to vector<1x128xf32>
    %cst_14 = arith.constant 9.99999971E-10 : f32
    %26 = vector.broadcast %cst_14 : f32 to vector<1x128xf32>
    %27 = arith.addf %26, %25 : vector<1x128xf32>
    %28 = tpu.reciprocal %27 {approx = true} : vector<1x128xf32> -> vector<1x128xf32>
    %29 = vector.broadcast %28 : vector<1x128xf32> to vector<128x128xf32>
    %30 = arith.mulf %23, %29 : vector<128x128xf32>
    %31 = arith.truncf %11 : vector<32x128xf32> to vector<32x128xbf16>
    %32 = arith.truncf %30 : vector<128x128xf32> to vector<128x128xbf16>
    %cst_15 = arith.constant dense<0.000000e+00> : vector<32x128xf32>
    %33 = tpu.matmul %31, %32, %cst_15 {dimension_numbers = #tpu.dot_dimension_numbers<[1], [0], [0], [1], [0, 0, 1, 1], [], []>} : vector<32x128xbf16>, vector<128x128xbf16>, vector<32x128xf32> -> vector<32x128xf32>
    %34 = arith.subf %5, %33 : vector<32x128xf32>
    %35 = arith.truncf %34 : vector<32x128xf32> to vector<32x128xbf16>
    %cst_16 = arith.constant dense<0.000000e+00> : vector<32x128xf32>
    %36 = tpu.matmul %1, %35, %cst_16 {dimension_numbers = #tpu.dot_dimension_numbers<[1], [0], [0], [1], [0, 0, 1, 1], [], []>} : vector<32x32xbf16>, vector<32x128xbf16>, vector<32x128xf32> -> vector<32x128xf32>
    %37 = vector.broadcast %3 : vector<32x1xf32> to vector<32x128xf32>
    %38 = arith.addf %36, %37 : vector<32x128xf32>
    %39 = arith.truncf %38 : vector<32x128xf32> to vector<32x128xbf16>
    %c0_17 = arith.constant 0 : index
    %c0_18 = arith.constant 0 : index
    %c0_19 = arith.constant 0 : index
    %40 = vector.load %arg6[%c0_17, %c0_18, %c0_19] : memref<1x32x128xbf16, #tpu.memory_space<vmem>>, vector<1x32x128xbf16>
    %41 = vector.shape_cast %40 : vector<1x32x128xbf16> to vector<32x128xbf16>
    %42 = vector.shape_cast %39 : vector<32x128xbf16> to vector<1x32x128xbf16>
    tpu.vector_store %arg6[%c0_17, %c0_18, %c0_19], %42 {strides = array<i32>} : memref<1x32x128xbf16, #tpu.memory_space<vmem>>, vector<1x32x128xbf16>,
    %cst_20 = arith.constant dense<0.000000e+00> : vector<32xf32>
    %43 = vector.multi_reduction <add>, %38, %cst_20 [1] : vector<32x128xf32> to vector<32xf32>
    %44 = arith.mulf %38, %38 : vector<32x128xf32>
    %cst_21 = arith.constant dense<0.000000e+00> : vector<32xf32>
    %45 = vector.multi_reduction <add>, %44, %cst_21 [1] : vector<32x128xf32> to vector<32xf32>
    %46 = vector.shape_cast %43 : vector<32xf32> to vector<1x32xf32>
    %47 = vector.shape_cast %45 : vector<32xf32> to vector<1x32xf32>
    %48 = tpu.concatenate %46, %47 in 0 : vector<1x32xf32>, vector<1x32xf32> -> vector<2x32xf32>
    %c0_22 = arith.constant 0 : index
    %c0_23 = arith.constant 0 : index
    %c0_24 = arith.constant 0 : index
    %49 = vector.load %arg7[%c0_22, %c0_23, %c0_24] : memref<1x2x32xf32, #tpu.memory_space<vmem>>, vector<1x2x32xf32>
    %50 = vector.shape_cast %49 : vector<1x2x32xf32> to vector<2x32xf32>
    %51 = vector.shape_cast %48 : vector<2x32xf32> to vector<1x2x32xf32>
    tpu.vector_store %arg7[%c0_22, %c0_23, %c0_24], %51 {strides = array<i32>} : memref<1x2x32xf32, #tpu.memory_space<vmem>>, vector<1x2x32xf32>,
    return
  }
  func.func @transform_0(%arg0: i32) -> (i32, i32, i32) {
    %c0_i32 = arith.constant 0 : i32
    %c0_i32_0 = arith.constant 0 : i32
    %c0_i32_1 = arith.constant 0 : i32
    return %arg0, %c0_i32, %c0_i32_0 : i32, i32, i32
  }
  func.func @transform_1(%arg0: i32) -> (i32, i32) {
    %c0_i32 = arith.constant 0 : i32
    %c0_i32_0 = arith.constant 0 : i32
    %c0_i32_1 = arith.constant 0 : i32
    return %c0_i32, %c0_i32_0 : i32, i32
  }
  func.func @transform_2(%arg0: i32) -> (i32, i32) {
    %c0_i32 = arith.constant 0 : i32
    %c0_i32_0 = arith.constant 0 : i32
    %c0_i32_1 = arith.constant 0 : i32
    return %c0_i32, %c0_i32_0 : i32, i32
  }
  func.func @transform_3(%arg0: i32) -> (i32, i32) {
    %c0_i32 = arith.constant 0 : i32
    %c0_i32_0 = arith.constant 0 : i32
    %c0_i32_1 = arith.constant 0 : i32
    return %c0_i32, %c0_i32_0 : i32, i32
  }
  func.func @transform_4(%arg0: i32) -> (i32, i32) {
    %c0_i32 = arith.constant 0 : i32
    %c0_i32_0 = arith.constant 0 : i32
    %c0_i32_1 = arith.constant 0 : i32
    return %c0_i32, %c0_i32_0 : i32, i32
  }
  func.func @transform_5(%arg0: i32) -> (i32, i32, i32) {
    %c0_i32 = arith.constant 0 : i32
    %c0_i32_0 = arith.constant 0 : i32
    %c0_i32_1 = arith.constant 0 : i32
    return %arg0, %c0_i32, %c0_i32_0 : i32, i32, i32
  }
  func.func @transform_6(%arg0: i32) -> (i32, i32, i32) {
    %c0_i32 = arith.constant 0 : i32
    %c0_i32_0 = arith.constant 0 : i32
    %c0_i32_1 = arith.constant 0 : i32
    return %arg0, %c0_i32, %c0_i32_0 : i32, i32, i32
  }
}

module attributes {stable_mosaic.version = 11 : i64} {
  func.func @_bn_relu_residual_kernel(%arg0: i32, %arg1: memref<2x32x128xf32, #tpu.memory_space<vmem>>, %arg2: memref<2x32x128xbf16, #tpu.memory_space<vmem>>, %arg3: memref<32x1xf32, #tpu.memory_space<vmem>>, %arg4: memref<32x1xf32, #tpu.memory_space<vmem>>, %arg5: memref<2x32x128xf32, #tpu.memory_space<vmem>>) attributes {dimension_semantics = [#tpu.dimension_semantics<parallel>], iteration_bounds = array<i64: 1>, scalar_prefetch = 0 : i64, scratch_operands = 0 : i64, tpu.core_type = #tpu.core_type<tc>, window_params = [{transform_indices = @transform_0, window_bounds = array<i64: 2, 32, 128>}, {transform_indices = @transform_1, window_bounds = array<i64: 2, 32, 128>}, {pipeline_mode = #tpu.pipeline_mode<synchronous>, transform_indices = @transform_2, window_bounds = array<i64: 32, 1>}, {pipeline_mode = #tpu.pipeline_mode<synchronous>, transform_indices = @transform_3, window_bounds = array<i64: 32, 1>}, {transform_indices = @transform_4, window_bounds = array<i64: 2, 32, 128>}]} {
    %c0 = arith.constant 0 : index
    %c0_0 = arith.constant 0 : index
    %c0_1 = arith.constant 0 : index
    %0 = vector.load %arg2[%c0, %c0_0, %c0_1] : memref<2x32x128xbf16, #tpu.memory_space<vmem>>, vector<2x32x128xbf16>
    %1 = arith.extf %0 : vector<2x32x128xbf16> to vector<2x32x128xf32>
    %c0_2 = arith.constant 0 : index
    %c0_3 = arith.constant 0 : index
    %2 = vector.load %arg3[%c0_2, %c0_3] : memref<32x1xf32, #tpu.memory_space<vmem>>, vector<32x1xf32>
    %3 = vector.shape_cast %2 : vector<32x1xf32> to vector<1x32x1xf32>
    %4 = vector.broadcast %3 : vector<1x32x1xf32> to vector<2x32x128xf32>
    %5 = arith.mulf %1, %4 : vector<2x32x128xf32>
    %c0_4 = arith.constant 0 : index
    %c0_5 = arith.constant 0 : index
    %6 = vector.load %arg4[%c0_4, %c0_5] : memref<32x1xf32, #tpu.memory_space<vmem>>, vector<32x1xf32>
    %7 = vector.shape_cast %6 : vector<32x1xf32> to vector<1x32x1xf32>
    %8 = vector.broadcast %7 : vector<1x32x1xf32> to vector<2x32x128xf32>
    %9 = arith.addf %5, %8 : vector<2x32x128xf32>
    %c0_6 = arith.constant 0 : index
    %c0_7 = arith.constant 0 : index
    %c0_8 = arith.constant 0 : index
    %10 = vector.load %arg1[%c0_6, %c0_7, %c0_8] : memref<2x32x128xf32, #tpu.memory_space<vmem>>, vector<2x32x128xf32>
    %cst = arith.constant 0.000000e+00 : f32
    %11 = vector.broadcast %cst : f32 to vector<2x32x128xf32>
    %12 = arith.maximumf %9, %11 : vector<2x32x128xf32>
    %13 = arith.addf %10, %12 : vector<2x32x128xf32>
    %c0_9 = arith.constant 0 : index
    %c0_10 = arith.constant 0 : index
    %c0_11 = arith.constant 0 : index
    %14 = vector.load %arg5[%c0_9, %c0_10, %c0_11] : memref<2x32x128xf32, #tpu.memory_space<vmem>>, vector<2x32x128xf32>
    tpu.vector_store %arg5[%c0_9, %c0_10, %c0_11], %13 {strides = array<i32>} : memref<2x32x128xf32, #tpu.memory_space<vmem>>, vector<2x32x128xf32>,
    return
  }
  func.func @transform_0(%arg0: i32) -> (i32, i32, i32) {
    %c0_i32 = arith.constant 0 : i32
    %c0_i32_0 = arith.constant 0 : i32
    %c0_i32_1 = arith.constant 0 : i32
    return %arg0, %c0_i32, %c0_i32_0 : i32, i32, i32
  }
  func.func @transform_1(%arg0: i32) -> (i32, i32, i32) {
    %c0_i32 = arith.constant 0 : i32
    %c0_i32_0 = arith.constant 0 : i32
    %c0_i32_1 = arith.constant 0 : i32
    return %arg0, %c0_i32, %c0_i32_0 : i32, i32, i32
  }
  func.func @transform_2(%arg0: i32) -> (i32, i32) {
    %c0_i32 = arith.constant 0 : i32
    %c0_i32_0 = arith.constant 0 : i32
    %c0_i32_1 = arith.constant 0 : i32
    return %c0_i32, %c0_i32_0 : i32, i32
  }
  func.func @transform_3(%arg0: i32) -> (i32, i32) {
    %c0_i32 = arith.constant 0 : i32
    %c0_i32_0 = arith.constant 0 : i32
    %c0_i32_1 = arith.constant 0 : i32
    return %c0_i32, %c0_i32_0 : i32, i32
  }
  func.func @transform_4(%arg0: i32) -> (i32, i32, i32) {
    %c0_i32 = arith.constant 0 : i32
    %c0_i32_0 = arith.constant 0 : i32
    %c0_i32_1 = arith.constant 0 : i32
    return %arg0, %c0_i32, %c0_i32_0 : i32, i32, i32
  }
}

</mosaic_0001>

<bundles_post_ra>
// kernel: sa_layer.3
= control target key start
LH: loop header
LB: loop body
LE: loop exit
PB: predicated region body
PF: predicated region fallthrough
CT: control target
= control target key end

     0   :  { %9 = vsyncpa [#allocation3], 0  ;;  %s331_s0 = inlined_call_operand.hbm [shape: f32[2,32,128], index: 0, kind: input, shape index: {}, may-alias: {0,4}]   ;;  %s332_s1 = inlined_call_operand.vmem [shape: bf16[2,32,128], index: 1, kind: input, shape index: {}]   ;;  %s333_s2 = inlined_call_operand.vmem [shape: f32[32,1], index: 2, kind: input, shape index: {}]   ;;  %s334_s3 = inlined_call_operand.vmem [shape: f32[32,1], index: 3, kind: input, shape index: {}]   ;;  %s335_s4 = inlined_call_operand.hbm [shape: f32[2,32,128], index: 4, kind: output, shape index: {}, may-alias: {0,4}]  }
   0x1   :  { %10 = vsyncpa [#allocation4], 0  ;;  %s235_s15 = smov [#allocation2]   ;;  %s187_s19 = scalar_lea.hbm %s331_s0, 1024 }
   0x2   :  { %s16_s16 = sshll.u32 %s235_s15, 4  ;;  %p188_p0 = scmp.ne.s32.totalorder %s331_s0, %s187_s19  ;;  %s17_s16 = int_to_ptr.vmem [resolvable:$true] %s16_s16 }
   0x3   :  { %p191_p1 = scmp.lt.u32.totalorder %s187_s19, %s331_s0 }
   0x5   :  { %p193_p2 = pnand %p191_p1, %p188_p0 }
   0x7   :  { %196 = shalt.err (!%p193_p2)
}
   0x8   :  { %s197_s24 = scalar_lea.vmem %s17_s16, 1024  ;;  %p202_p4 = scmp.lt.s32.totalorder %s17_s16, %s17_s16 }
   0x9   :  { %p198_p3 = scmp.ne.s32.totalorder %s17_s16, %s197_s24  ;;  %p203_p5 = scmp.lt.s32.totalorder %s197_s24, %s197_s24 }
   0xb   :  { %p204_p6 = por %p203_p5, %p202_p4 }
   0xd   :  { %p205_p7 = pnand %p204_p6, %p198_p3 }
   0xf   :  { %208 = shalt.err (!%p205_p7)
}
  0x10   :  { %s236_s25 = smov 128   ;;  %s237_s26 = smov 8  }
  0x11   :  { %22 = dma.hbm_to_vmem [thread:$0]  %s331_s0, 1024, %s17_s16, [#allocation3], %s236_s25, %s236_s25, %s237_s26  }
  0x12   :  { %231 = dma.done.wait [#allocation3], 1024  }
  0x13   :  { %232 = vsyncadd [#allocation3], 4294966272  ;;  %v238_v0 = vmov 0   ;;  %v50_v1 = vld [vmem:[%s333_s2 + $0x10] sm:$0xff]  ;;  %v48_v2 = vld [vmem:[%s333_s2] sm:$0xff] }
  0x14   :  { %186 = vset.pattern.permute.xlu1 %v238_v0  ;;  %185 = vset.pattern.permute.xlu0 %v238_v0  ;;  %v51_v3 = vld [vmem:[%s333_s2 + $0x18] sm:$0xff]  ;;  %v49_v4 = vld [vmem:[%s333_s2 + $0x8] sm:$0xff]  ;;  %v80_v6 = vld [vmem:[%s334_s3] sm:$0xff] }
  0x15   :  { %64 = vperm.xlu1 %186, %v50_v1   ;;  %54 = vperm.xlu0 %185, %v48_v2   ;;  %v81_v5 = vld [vmem:[%s334_s3 + $0x8] sm:$0xff]  ;;  %v83_v7 = vld [vmem:[%s334_s3 + $0x18] sm:$0xff]  ;;  %v82_v8 = vld [vmem:[%s334_s3 + $0x10] sm:$0xff] }
  0x16   :  { %v162_v11 = vld [vmem:[%s332_s1] sm:$0xff]   ;;  %v178_v12 = vld [vmem:[%s332_s1 + $0x10] sm:$0xff]   ;;  %v177_v19 = vld [vmem:[%s332_s1 + $0x8] sm:$0xff]  }
  0x17   :  { %v163_v13 = vunpack.c.l.bf16 %v162_v11  ;;  %v171_v14 = vunpack.c.l.bf16 %v178_v12  ;;  %v164_v15 = vunpack.c.h.bf16 %v162_v11  ;;  %v172_v16 = vunpack.c.h.bf16 %v178_v12  ;;  %v179_v20 = vld [vmem:[%s332_s1 + $0x18] sm:$0xff]   ;;  %v113_v31 = vld [vmem:[#allocation2 + $0x8] sm:$0xff]  ;;  %v112_v37 = vld [vmem:[#allocation2] sm:$0xff]  ;;  %s239_s1 = smov [#allocation5]  }
  0x18   :  { %v167_v25 = vunpack.c.l.bf16 %v177_v19  ;;  %v175_v26 = vunpack.c.l.bf16 %v179_v20  ;;  %v168_v27 = vunpack.c.h.bf16 %v177_v19  ;;  %v176_v28 = vunpack.c.h.bf16 %v179_v20  ;;  %v117_v36 = vld [vmem:[#allocation2 + $0x28] sm:$0xff]  ;;  %v116_v38 = vld [vmem:[#allocation2 + $0x20] sm:$0xff]  ;;  %v115_v53 = vld [vmem:[#allocation2 + $0x18] sm:$0xff]  ;;  %s149_s24 = sshll.u32 %s239_s1, 4  ;;  %s150_s24 = int_to_ptr.vmem [resolvable:$true] %s149_s24 }
  0x19   :  { %69 = vperm.xlu1 %186, %v51_v3   ;;  %59 = vperm.xlu0 %185, %v49_v4   ;;  %v119_v58 = vld [vmem:[#allocation2 + $0x38] sm:$0xff]  ;;  %v114_v59 = vld [vmem:[#allocation2 + $0x10] sm:$0xff]  ;;  %s209_s27 = scalar_lea.vmem %s150_s24, 1024  ;;  %p214_p9 = scmp.lt.s32.totalorder %s150_s24, %s150_s24 }
  0x1a   :  { %v118_v60 = vld [vmem:[#allocation2 + $0x30] sm:$0xff]  ;;  %p210_p8 = scmp.ne.s32.totalorder %s150_s24, %s209_s27  ;;  %p215_p10 = scmp.lt.s32.totalorder %s209_s27, %s209_s27 }
  0x1c   :  { %p216_p11 = por %p215_p10, %p214_p9 }
  0x1d   :  { %91 = vperm.xlu1 %186, %v81_v5   ;;  %86 = vperm.xlu0 %185, %v80_v6  }
  0x1e   :  { %p217_p12 = pnand %p216_p11, %p210_p8 }
  0x21   :  { %101 = vperm.xlu1 %186, %v83_v7   ;;  %96 = vperm.xlu0 %185, %v82_v8  }
  0x94   :  { %v65_v9 = vpop.permute.xlu1 %64  ;;  %v55_v10 = vpop.permute.xlu0 %54 }
  0x95   :  { %v72_v21 = vmul.f32 %v163_v13, %v55_v10  ;;  %v76_v22 = vmul.f32 %v171_v14, %v55_v10  ;;  %v74_v43 = vmul.f32 %v167_v25, %v65_v9  ;;  %v78_v44 = vmul.f32 %v175_v26, %v65_v9 }
  0x98   :  { %v70_v17 = vpop.permute.xlu1 %69  ;;  %v60_v18 = vpop.permute.xlu0 %59 }
  0x99   :  { %v73_v23 = vmul.f32 %v164_v15, %v60_v18  ;;  %v77_v24 = vmul.f32 %v172_v16, %v60_v18  ;;  %v75_v45 = vmul.f32 %v168_v27, %v70_v17  ;;  %v79_v46 = vmul.f32 %v176_v28, %v70_v17 }
  0x9c   :  { %v92_v29 = vpop.permute.xlu1 %91  ;;  %v87_v30 = vpop.permute.xlu0 %86 }
  0x9d   :  { %v105_v32 = vadd.f32 %v92_v29, %v73_v23  ;;  %v109_v33 = vadd.f32 %v92_v29, %v77_v24  ;;  %v104_v34 = vadd.f32 %v87_v30, %v72_v21  ;;  %v108_v35 = vadd.f32 %v87_v30, %v76_v22 }
  0x9f   :  { %v121_v39 = vmax.f32 %v105_v32, 0.0  ;;  %v125_v40 = vmax.f32 %v109_v33, 0.0  ;;  %v120_v41 = vmax.f32 %v104_v34, 0.0  ;;  %v124_v42 = vmax.f32 %v108_v35, 0.0 }
  0xa0   :  { %v102_v47 = vpop.permute.xlu1 %101  ;;  %v97_v48 = vpop.permute.xlu0 %96 }
  0xa1   :  { %v129_v49 = vadd.f32 %v121_v39, %v113_v31  ;;  %v133_v50 = vadd.f32 %v125_v40, %v117_v36  ;;  %v128_v51 = vadd.f32 %v120_v41, %v112_v37  ;;  %v132_v52 = vadd.f32 %v124_v42, %v116_v38 }
  0xa2   :  { %v107_v54 = vadd.f32 %v102_v47, %v75_v45  ;;  %v111_v55 = vadd.f32 %v102_v47, %v79_v46  ;;  %v106_v56 = vadd.f32 %v97_v48, %v74_v43  ;;  %v110_v57 = vadd.f32 %v97_v48, %v78_v44 }
  0xa3   :  { %137 = vst [vmem:[#allocation5 + $0x8] sm:$0xff] %v129_v49  ;;  %141 = vst [vmem:[#allocation5 + $0x28] sm:$0xff] %v133_v50 }
  0xa4   :  { %136 = vst [vmem:[#allocation5] sm:$0xff] %v128_v51  ;;  %140 = vst [vmem:[#allocation5 + $0x20] sm:$0xff] %v132_v52  ;;  %v123_v61 = vmax.f32 %v107_v54, 0.0  ;;  %v127_v62 = vmax.f32 %v111_v55, 0.0  ;;  %v122_v63 = vmax.f32 %v106_v56, 0.0  ;;  %v126_v0 = vmax.f32 %v110_v57, 0.0 }
  0xa6   :  { %v131_v1 = vadd.f32 %v123_v61, %v115_v53  ;;  %v135_v2 = vadd.f32 %v127_v62, %v119_v58  ;;  %v130_v3 = vadd.f32 %v122_v63, %v114_v59  ;;  %v134_v4 = vadd.f32 %v126_v0, %v118_v60 }
  0xa8   :  { %139 = vst [vmem:[#allocation5 + $0x18] sm:$0xff] %v131_v1  ;;  %143 = vst [vmem:[#allocation5 + $0x38] sm:$0xff] %v135_v2 }
  0xa9   :  { %138 = vst [vmem:[#allocation5 + $0x10] sm:$0xff] %v130_v3  ;;  %142 = vst [vmem:[#allocation5 + $0x30] sm:$0xff] %v134_v4 }
  0xaa   :  { %220 = shalt.err (!%p217_p12)
}
  0xab   :  { %s221_s30 = scalar_lea.hbm %s335_s4, 1024 }
  0xac   :  { %p222_p13 = scmp.ne.s32.totalorder %s335_s4, %s221_s30  ;;  %p225_p0 = scmp.lt.u32.totalorder %s221_s30, %s335_s4 }
  0xae   :  { %p227_p1 = pnand %p225_p0, %p222_p13 }
  0xb0   :  { %230 = shalt.err (!%p227_p1)
}
  0xb1   :  { %155 = dma.vmem_to_hbm [thread:$0]  %s150_s24, 1024, %s335_s4, [#allocation4], %s236_s25, %s236_s25, %s237_s26  }
  0xb2   :  { %233 = dma.done.wait [#allocation4], 1024  }
  0xb3   :  { %234 = vsyncadd [#allocation4], 4294966272 }
  0xb4   :  { %159 = vsyncpa [#allocation3], 1 }
  0xb5   :  { %160 = vsyncpa [#allocation4], 1 }

// kernel: sa_layer.2
= control target key start
LH: loop header
LB: loop body
LE: loop exit
PB: predicated region body
PF: predicated region fallthrough
CT: control target
= control target key end

     0   :  { %s1340_s21 = smov 0   ;;  %s1589_s0 = inlined_call_operand.vmem [shape: f32[2,32,128], index: 0, kind: input, shape index: {}]   ;;  %s1590_s1 = inlined_call_operand.vmem [shape: bf16[64,32], index: 1, kind: input, shape index: {}]   ;;  %s1591_s2 = inlined_call_operand.vmem [shape: f32[32,1], index: 2, kind: input, shape index: {}]   ;;  %s1592_s3 = inlined_call_operand.vmem [shape: bf16[32,32], index: 3, kind: input, shape index: {}]   ;;  %s1593_s4 = inlined_call_operand.vmem [shape: f32[32,1], index: 4, kind: input, shape index: {}]   ;;  %s1594_s5 = inlined_call_operand.vmem [shape: bf16[2,32,128], index: 5, kind: output, shape index: {0}]   ;;  %s1595_s6 = inlined_call_operand.vmem [shape: f32[2,2,32], index: 6, kind: output, shape index: {1}]  }
   0x1 LB: > { %s1070_s22 = sadd.s32 4294967295, %s1302_s21   ;;  %p1074_p0 = scmp.ge.s32.totalorder %s1302_s21, 1  ;;  %s1302_s21 = sphi %s1340_s21, %s17_s21  }
   0x2   : > { %p215_p1 = scmp.lt.s32.totalorder %s1302_s21, 3 }
   0x4   : > { %p216_p2 = pnand %p1074_p0, %p215_p1 }
   0x5   : > { %p249_p3 = scmp.lt.s32.totalorder (!%p216_p2), %s1070_s22, 1  ;;  %v1224_v0 = vld [vmem:[%s1590_s1] sm:$0xff] (!%p216_p2)   ;;  %vm310_vm0 = vcmask (!%p216_p2), 261120   ;;  %v1225_v7 = vld [vmem:[%s1590_s1 + $0x8] sm:$0xff] (!%p216_p2)   ;;  %v1226_v38 = vld [vmem:[%s1590_s1 + $0x10] sm:$0xff] (!%p216_p2)   ;;  %v1304_v40 = vmov (!%p216_p2), 0  }
   0x6   : > { %219 = sbr.rel (%p216_p2) target bundleno = 1590 (0x636), region = 40  ;;  %1157 = vmatprep.mubr.msk.bf16.mxu0 (!%p216_p2), %vm310_vm0, %v1224_v0  ;;  %v1227_v39 = vld [vmem:[%s1590_s1 + $0x18] sm:$0xff] (!%p216_p2)   ;;  %1222 = vset.pattern.permute.xlu1 (!%p216_p2), %v1304_v40  ;;  %vm939_vm1 = vcmask (!%p216_p2), 130112   ;;  %vm946_vm2 = vcmask (!%p216_p2), 195712   ;;  %vm953_vm3 = vcmask (!%p216_p2), 261312   ;;  %vm980_vm4 = vcmask (!%p216_p2), 1040384  }
   0x7   : > { %vm982_vm5 = vcmask (!%p216_p2), 254976  }
   0xd   : > { %s1597_s22 = smov (!%p249_p3, %s1070_s22), 1 }
   0xe   : > { %s1106_s25 = sshll.u32 %s1597_s22, 5  ;;  %s1107_s9 = sshll.u32 %s1597_s22, 4 }
   0xf   : > { %s253_s28 = scalar_lea.vmem %s1589_s0, %s1106_s25  ;;  %s258_s12 = scalar_lea.vmem %s1594_s5, %s1107_s9 }
  0x10   : > { %v1358_v1 = vld [vmem:[%s253_s28] sm:$0xff]  ;;  %v1360_v2 = vld [vmem:[%s253_s28 + $0x8] sm:$0xff]  ;;  %v1362_v3 = vld [vmem:[%s253_s28 + $0x10] sm:$0xff]  ;;  %s1079_s13 = sshll.u32 %s1597_s22, 1 }
  0x11   : > { %v288_v4 = vpack.c.bf16 %v1360_v2, %v1358_v1  ;;  %v1366_v5 = vld [vmem:[%s253_s28 + $0x18] sm:$0xff]  ;;  %s262_s16 = scalar_lea.vmem %s1595_s6, %s1079_s13 }
  0x12   : > { %v289_v6 = vpack.c.bf16 %v1366_v5, %v1362_v3 }
  0x13   : > { %1153 = vmatprep.subr.bf16.mxu0 %v288_v4 }
  0x14   : > { %1154 = vmatpush3.bf16.msra.mxu0 %v288_v4 }
  0x15   : > { %1155 = vmatprep.subr.bf16.mxu0 %v289_v6 }
  0x18   : > { %1156 = vmatpush3.bf16.msra.mxu0 %v289_v6 }
  0x1b   : > { %1158 = vmatmul.mubr.msk.bf16.vlgmr.msra.gmra.mrb[0].mxu0 %vm310_vm0, %v1225_v7 }
  0x1c   : > { %1161 = vmatprep.mubr.msk.bf16.mxu0 %vm310_vm0, %v1226_v38 }
  0x23   : > { %1162 = vmatmul.mubr.msk.bf16.gmra.mrb[4].mxu0 %vm310_vm0, %v1227_v39 }
  0xee   : > { %v1159_v8 = vpop.f32.mrb[0].mxu0 }
  0xef   : > { %v357_v9 = vpop.f32.mrb[1].mxu0 }
  0xf0   : > { %v1160_v10 = vpop.f32.mrb[2].mxu0 }
  0xf1   : > { %v413_v11 = vpack.c.bf16 %v1160_v10, %v1159_v8  ;;  %v360_v12 = vpop.f32.mrb[3].mxu0 }
  0xf2   : > { %v412_v13 = vpack.c.bf16 %v360_v12, %v357_v9 }
  0xf4   : > { %414 = vxpose.xlu0.c.b16.start [1/2] (short) %v412_v13, 128  ;;  %1165 = vmatprep.subr.bf16.mxu1 %v412_v13 }
  0xf5   : > { %1166 = vmatpush3.bf16.msra.mxu1 %v412_v13 }
  0xf6   : > { %1167 = vmatprep.subr.bf16.mxu1 %v413_v11 }
  0xf8   : > { %415 = vxpose.xlu0.c.b16.end [2/2] (short) %v413_v11, 128 }
  0xf9   : > { %1168 = vmatpush3.bf16.msra.mxu1 %v413_v11 }
 0x101   : > { %1223 = vset.pattern.permute.xlu0 %v1304_v40 }
 0x15a   : > { %v422_v14 = vpop.trf.xlu0 }
 0x15b   : > { %1169 = vmatprep.mubr.msk.bf16.mxu1 %vm310_vm0, %v422_v14 }
 0x15e   : > { %v423_v15 = vpop.trf.xlu0 }
 0x15f   : > { %1170 = vmatmul.mubr.msk.bf16.vlgmr.msra.gmra.mrb[0].mxu1 %vm310_vm0, %v423_v15 }
 0x162   : > { %v424_v16 = vpop.trf.xlu0 }
 0x163   : > { %1173 = vmatprep.mubr.msk.bf16.mxu1 %vm310_vm0, %v424_v16 }
 0x166   : > { %v425_v17 = vpop.trf.xlu0 }
 0x167   : > { %1174 = vmatmul.mubr.msk.bf16.gmra.mrb[4].mxu1 %vm310_vm0, %v425_v17 }
 0x16a   : > { %v426_v18 = vpop.trf.xlu0 }
 0x16b   : > { %1177 = vmatprep.mubr.msk.bf16.mxu1 %vm310_vm0, %v426_v18 }
 0x16e   : > { %v427_v19 = vpop.trf.xlu0 }
 0x16f   : > { %1178 = vmatmul.mubr.msk.bf16.gmra.mrb[8].mxu1 %vm310_vm0, %v427_v19 }
 0x172   : > { %v428_v20 = vpop.trf.xlu0 }
 0x173   : > { %1181 = vmatprep.mubr.msk.bf16.mxu1 %vm310_vm0, %v428_v20 }
 0x176   : > { %v429_v21 = vpop.trf.xlu0 }
 0x177   : > { %1182 = vmatmul.mubr.msk.bf16.gmra.mrb[12].mxu1 %vm310_vm0, %v429_v21 }
 0x232   : > { %v1171_v22 = vpop.f32.mrb[0].mxu1 }
 0x233   : > { %555 = vmax.xlane.f32.xlu0 %v1171_v22  ;;  %v488_v23 = vpop.f32.mrb[1].mxu1 }
 0x234   : > { %551 = vmax.xlane.f32.xlu1 %v488_v23  ;;  %v1172_v24 = vpop.f32.mrb[2].mxu1 }
 0x235   : > { %v491_v25 = vpop.f32.mrb[3].mxu1 }
 0x238   : > { %557 = vmax.xlane.f32.xlu1 %v1172_v24 }
 0x23a   : > { %v1175_v26 = vpop.f32.mrb[4].mxu1 }
 0x23b   : > { %v504_v27 = vpop.f32.mrb[5].mxu1 }
 0x23c   : > { %553 = vmax.xlane.f32.xlu1 %v491_v25  ;;  %v1382_v28 = vpop.f32.mrb[6].mxu1 }
 0x23d   : > { %v1384_v29 = vpop.f32.mrb[7].mxu1 }
 0x240   : > { %563 = vmax.xlane.f32.xlu1 %v1175_v26 }
 0x242   : > { %v1386_v30 = vpop.f32.mrb[8].mxu1 }
 0x243   : > { %v1388_v31 = vpop.f32.mrb[9].mxu1 }
 0x244   : > { %559 = vmax.xlane.f32.xlu1 %v504_v27  ;;  %v1390_v32 = vpop.f32.mrb[10].mxu1 }
 0x245   : > { %v1392_v33 = vpop.f32.mrb[11].mxu1 }
 0x248   : > { %565 = vmax.xlane.f32.xlu1 %v1382_v28 }
 0x24a   : > { %v1395_v34 = vpop.f32.mrb[12].mxu1 }
 0x24b   : > { %v1397_v35 = vpop.f32.mrb[13].mxu1 }
 0x24c   : > { %561 = vmax.xlane.f32.xlu1 %v1384_v29  ;;  %v1400_v36 = vpop.f32.mrb[14].mxu1 }
 0x24d   : > { %v1402_v37 = vpop.f32.mrb[15].mxu1 }
 0x24e   : > { %577 = vmax.xlane.f32.xlu0 %v1402_v37 }
 0x250   : > { %571 = vmax.xlane.f32.xlu1 %v1386_v30 }
 0x252   : > { %581 = vmax.xlane.f32.xlu0 %v1400_v36 }
 0x254   : > { %567 = vmax.xlane.f32.xlu1 %v1388_v31 }
 0x258   : > { %569 = vmax.xlane.f32.xlu1 %v1392_v33 }
 0x25c   : > { %573 = vmax.xlane.f32.xlu1 %v1390_v32 }
 0x260   : > { %575 = vmax.xlane.f32.xlu1 %v1397_v35 }
 0x264   : > { %579 = vmax.xlane.f32.xlu1 %v1395_v34 }
 0x2c0   : > { %v556_v41 = vpop.xlane.xlu0 %555 }
 0x2c1   : > { %v552_v42 = vpop.xlane.xlu1 %551  ;;  %v585_v43 = vsub.f32 %v1171_v22, %v556_v41 }
 0x2c2   : > { %v583_v44 = vsub.f32 %v488_v23, %v552_v42 }
 0x2c3   : > { %v603_v47 = vmul.f32 1.442695, %v585_v43 }
 0x2c4   : > { %v599_v45 = vmul.f32 1.442695, %v583_v44 }
 0x2c5   : > { %v558_v46 = vpop.xlane.xlu1 %557 }
 0x2c6   : > { %1230 = vpow2.f32 %v599_v45  ;;  %v586_v49 = vsub.f32 %v1172_v24, %v558_v46  ;;  %v276_v45 = vld [vmem:[%s1591_s2] sm:$0xff]  ;;  %v278_v46 = vld [vmem:[%s1591_s2 + $0x10] sm:$0xff] }
 0x2c7   : > { %1232 = vpow2.f32 %v603_v47  ;;  %v277_v47 = vld [vmem:[%s1591_s2 + $0x8] sm:$0xff] }
 0x2c8   : > { %v605_v53 = vmul.f32 1.442695, %v586_v49  ;;  %v280_v49 = vld [vmem:[%s1593_s4] sm:$0xff] }
 0x2c9   : > { %v554_v48 = vpop.xlane.xlu1 %553 }
 0x2ca   : > { %v584_v50 = vsub.f32 %v491_v25, %v554_v48  ;;  %v279_v48 = vld [vmem:[%s1591_s2 + $0x18] sm:$0xff] }
 0x2cc   : > { %v601_v51 = vmul.f32 1.442695, %v584_v50  ;;  %v281_v50 = vld [vmem:[%s1593_s4 + $0x8] sm:$0xff] }
 0x2cd   : > { %v564_v52 = vpop.xlane.xlu1 %563 }
 0x2ce   : > { %1234 = vpow2.f32 %v601_v51  ;;  %v589_v56 = vsub.f32 %v1175_v26, %v564_v52  ;;  %v282_v51 = vld [vmem:[%s1593_s4 + $0x10] sm:$0xff]  ;;  %v283_v52 = vld [vmem:[%s1593_s4 + $0x18] sm:$0xff] }
 0x2cf   : > { %1236 = vpow2.f32 %v605_v53  ;;  %v1502_v53 = vpop.f32.mrb[4].mxu0 }
 0x2d0   : > { %v1420_v54 = vpop.eup %1230  ;;  %v611_v61 = vmul.f32 1.442695, %v589_v56 }
 0x2d1   : > { %v560_v55 = vpop.xlane.xlu1 %559  ;;  %631 = vadd.xlane.f32.xlu1 %v1420_v54  ;;  %v1423_v58 = vpop.eup %1232 }
 0x2d2   : > { %v587_v57 = vsub.f32 %v504_v27, %v560_v55  ;;  %v1504_v55 = vpop.f32.mrb[5].mxu0 }
 0x2d3   : > { %v1506_v56 = vpop.f32.mrb[6].mxu0 }
 0x2d4   : > { %v607_v59 = vmul.f32 1.442695, %v587_v57  ;;  %v1508_v57 = vpop.f32.mrb[7].mxu0 }
 0x2d5   : > { %v566_v60 = vpop.xlane.xlu1 %565  ;;  %635 = vadd.xlane.f32.xlu1 %v1423_v58 }
 0x2d6   : > { %1238 = vpow2.f32 %v607_v59  ;;  %v590_v0 = vsub.f32 %v1382_v28, %v566_v60 }
 0x2d7   : > { %1240 = vpow2.f32 %v611_v61 }
 0x2d8   : > { %v1426_v62 = vpop.eup %1234  ;;  %v613_v9 = vmul.f32 1.442695, %v590_v0 }
 0x2d9   : > { %v562_v63 = vpop.xlane.xlu1 %561  ;;  %633 = vadd.xlane.f32.xlu0 %v1426_v62  ;;  %v1431_v6 = vpop.eup %1236 }
 0x2da   : > { %v588_v4 = vsub.f32 %v1384_v29, %v562_v63 }
 0x2db   : > { %v578_v15 = vpop.xlane.xlu0 %577 }
 0x2dc   : > { %v609_v7 = vmul.f32 1.442695, %v588_v4  ;;  %v596_v22 = vsub.f32 %v1402_v37, %v578_v15 }
 0x2dd   : > { %v572_v8 = vpop.xlane.xlu1 %571  ;;  %637 = vadd.xlane.f32.xlu0 %v1431_v6 }
 0x2de   : > { %1242 = vpow2.f32 %v609_v7  ;;  %v593_v11 = vsub.f32 %v1386_v30, %v572_v8  ;;  %v625_v28 = vmul.f32 1.442695, %v596_v22 }
 0x2df   : > { %1244 = vpow2.f32 %v613_v9  ;;  %v582_v24 = vpop.xlane.xlu0 %581 }
 0x2e0   : > { %v1434_v10 = vpop.eup %1238  ;;  %v619_v17 = vmul.f32 1.442695, %v593_v11  ;;  %v598_v29 = vsub.f32 %v1400_v36, %v582_v24 }
 0x2e1   : > { %v568_v12 = vpop.xlane.xlu1 %567  ;;  %639 = vadd.xlane.f32.xlu1 %v1434_v10  ;;  %v1439_v14 = vpop.eup %1240 }
 0x2e2   : > { %v591_v13 = vsub.f32 %v1388_v31, %v568_v12  ;;  %v629_v38 = vmul.f32 1.442695, %v598_v29 }
 0x2e4   : > { %v615_v16 = vmul.f32 1.442695, %v591_v13 }
 0x2e5   : > { %v570_v18 = vpop.xlane.xlu1 %569  ;;  %643 = vadd.xlane.f32.xlu1 %v1439_v14 }
 0x2e6   : > { %1246 = vpow2.f32 %v615_v16  ;;  %v592_v19 = vsub.f32 %v1392_v33, %v570_v18 }
 0x2e7   : > { %1248 = vpow2.f32 %v619_v17 }
 0x2e8   : > { %v1443_v20 = vpop.eup %1242  ;;  %v617_v21 = vmul.f32 1.442695, %v592_v19 }
 0x2e9   : > { %v574_v23 = vpop.xlane.xlu1 %573  ;;  %641 = vadd.xlane.f32.xlu0 %v1443_v20  ;;  %v1448_v26 = vpop.eup %1244 }
 0x2ea   : > { %1250 = vpow2.f32 %v617_v21  ;;  %v594_v25 = vsub.f32 %v1390_v32, %v574_v23 }
 0x2ec   : > { %v621_v27 = vmul.f32 1.442695, %v594_v25 }
 0x2ed   : > { %v576_v30 = vpop.xlane.xlu1 %575  ;;  %645 = vadd.xlane.f32.xlu0 %v1448_v26 }
 0x2ee   : > { %1252 = vpow2.f32 %v621_v27  ;;  %v595_v31 = vsub.f32 %v1397_v35, %v576_v30 }
 0x2ef   : > { %1254 = vpow2.f32 %v625_v28 }
 0x2f0   : > { %v1453_v33 = vpop.eup %1246  ;;  %v623_v37 = vmul.f32 1.442695, %v595_v31 }
 0x2f1   : > { %647 = vadd.xlane.f32.xlu1 %v1453_v33  ;;  %v580_v32 = vpop.xlane.xlu1 %579  ;;  %v1457_v40 = vpop.eup %1248 }
 0x2f2   : > { %1256 = vpow2.f32 %v623_v37  ;;  %v597_v39 = vsub.f32 %v1395_v34, %v580_v32 }
 0x2f3   : > { %1258 = vpow2.f32 %v629_v38 }
 0x2f4   : > { %v1459_v36 = vpop.eup %1250  ;;  %v627_v41 = vmul.f32 1.442695, %v597_v39 }
 0x2f5   : > { %651 = vadd.xlane.f32.xlu1 %v1457_v40  ;;  %649 = vadd.xlane.f32.xlu0 %v1459_v36 }
 0x2f6   : > { %1260 = vpow2.f32 %v627_v41 }
 0x2f8   : > { %v1463_v35 = vpop.eup %1252 }
 0x2f9   : > { %653 = vadd.xlane.f32.xlu0 %v1463_v35  ;;  %v1466_v42 = vpop.eup %1254 }
 0x2fc   : > { %v1468_v43 = vpop.eup %1256 }
 0x2fd   : > { %655 = vadd.xlane.f32.xlu1 %v1468_v43  ;;  %657 = vadd.xlane.f32.xlu0 %v1466_v42  ;;  %v1472_v34 = vpop.eup %1258 }
 0x300   : > { %v1474_v44 = vpop.eup %1260 }
 0x301   : > { %659 = vadd.xlane.f32.xlu1 %v1474_v44  ;;  %661 = vadd.xlane.f32.xlu0 %v1472_v34 }
 0x312   : > { %390 = vperm.xlu1 %1222, %v276_v45  }
 0x316   : > { %400 = vperm.xlu1 %1222, %v278_v46  }
 0x317   : > { %395 = vperm.xlu0 %1223, %v277_v47  }
 0x31a   : > { %405 = vperm.xlu1 %1222, %v279_v48  }
 0x31e   : > { %801 = vperm.xlu1 %1222, %v280_v49  }
 0x322   : > { %806 = vperm.xlu1 %1222, %v281_v50  }
 0x326   : > { %811 = vperm.xlu1 %1222, %v282_v51  }
 0x32a   : > { %816 = vperm.xlu1 %1222, %v283_v52  }
 0x35e   : > { %v632_v59 = vpop.xlane.xlu1 %631 }
 0x362   : > { %v636_v61 = vpop.xlane.xlu1 %635 }
 0x366   : > { %v634_v60 = vpop.xlane.xlu0 %633 }
 0x367   : > { %1262 = vrcp.f32 %v634_v60 }
 0x368   : > { %1264 = vrcp.f32 %v632_v59 }
 0x369   : > { %1266 = vrcp.f32 %v636_v61 }
 0x36a   : > { %v638_v63 = vpop.xlane.xlu0 %637 }
 0x36b   : > { %1268 = vrcp.f32 %v638_v63 }
 0x36e   : > { %v640_v0 = vpop.xlane.xlu1 %639 }
 0x36f   : > { %1270 = vrcp.f32 %v640_v0 }
 0x371   : > { %v1263_v4 = vpop.eup %1262 }
 0x372   : > { %v1265_v7 = vpop.eup %1264  ;;  %v1511_v8 = vmul.f32 %v1263_v4, %v1426_v62  ;;  %v644_v11 = vpop.xlane.xlu1 %643 }
 0x373   : > { %v1514_v12 = vmul.f32 %v1265_v7, %v1420_v54  ;;  %v1267_v13 = vpop.eup %1266 }
 0x374   : > { %v1519_v18 = vmul.f32 %v1267_v13, %v1423_v58 }
 0x375   : > { %v695_v15 = vadd.f32 %v1511_v8, %v1514_v12  ;;  %v1269_v16 = vpop.eup %1268 }
 0x376   : > { %v642_v9 = vpop.xlane.xlu0 %641  ;;  %v1522_v62 = vmul.f32 %v1269_v16, %v1431_v6 }
 0x377   : > { %1272 = vrcp.f32 %v642_v9  ;;  %v696_v21 = vadd.f32 %v695_v15, %v1519_v18 }
 0x378   : > { %1274 = vrcp.f32 %v644_v11 }
 0x379   : > { %v1271_v19 = vpop.eup %1270  ;;  %v697_v24 = vadd.f32 %v696_v21, %v1522_v62 }
 0x37a   : > { %v646_v17 = vpop.xlane.xlu0 %645  ;;  %v1526_v54 = vmul.f32 %v1271_v19, %v1434_v10 }
 0x37b   : > { %1276 = vrcp.f32 %v646_v17 }
 0x37c   : > { %v698_v28 = vadd.f32 %v697_v24, %v1526_v54 }
 0x37e   : > { %v648_v22 = vpop.xlane.xlu1 %647 }
 0x37f   : > { %1278 = vrcp.f32 %v648_v22 }
 0x381   : > { %v1273_v23 = vpop.eup %1272 }
 0x382   : > { %v1530_v25 = vmul.f32 %v1273_v23, %v1443_v20  ;;  %v652_v58 = vpop.xlane.xlu1 %651  ;;  %v650_v27 = vpop.xlane.xlu0 %649 }
 0x383   : > { %1280 = vrcp.f32 %v652_v58  ;;  %v1275_v6 = vpop.eup %1274 }
 0x384   : > { %1282 = vrcp.f32 %v650_v27  ;;  %v699_v29 = vadd.f32 %v698_v28, %v1530_v25  ;;  %v1535_v10 = vmul.f32 %v1275_v6, %v1439_v14 }
 0x385   : > { %v1277_v30 = vpop.eup %1276 }
 0x386   : > { %v654_v31 = vpop.xlane.xlu0 %653  ;;  %v1538_v38 = vmul.f32 %v1277_v30, %v1448_v26  ;;  %v700_v20 = vadd.f32 %v699_v29, %v1535_v10 }
 0x387   : > { %1284 = vrcp.f32 %v654_v31 }
 0x388   : > { %v701_v46 = vadd.f32 %v700_v20, %v1538_v38 }
 0x389   : > { %v1279_v37 = vpop.eup %1278 }
 0x38a   : > { %v656_v32 = vpop.xlane.xlu1 %655  ;;  %v658_v39 = vpop.xlane.xlu0 %657  ;;  %v1542_v41 = vmul.f32 %v1279_v37, %v1453_v33 }
 0x38b   : > { %1286 = vrcp.f32 %v656_v32 }
 0x38c   : > { %1288 = vrcp.f32 %v658_v39  ;;  %v702_v26 = vadd.f32 %v701_v46, %v1542_v41 }
 0x38d   : > { %v1281_v45 = vpop.eup %1280 }
 0x38e   : > { %v1283_v47 = vpop.eup %1282  ;;  %v660_v14 = vpop.xlane.xlu1 %659  ;;  %v689_v51 = vmul.f32 %v1281_v45, %v1457_v40 }
 0x38f   : > { %v662_v48 = vpop.xlane.xlu0 %661  ;;  %v688_v49 = vmul.f32 %v1283_v47, %v1459_v36  ;;  %1290 = vrcp.f32 %v660_v14 }
 0x390   : > { %1292 = vrcp.f32 %v662_v48 }
 0x391   : > { %v1285_v50 = vpop.eup %1284  ;;  %v703_v52 = vadd.f32 %v702_v26, %v688_v49 }
 0x392   : > { %v690_v33 = vmul.f32 %v1285_v50, %v1463_v35  ;;  %v391_v59 = vpop.permute.xlu1 %390 }
 0x393   : > { %v704_v60 = vadd.f32 %v703_v52, %v689_v51  ;;  %v408_v63 = vadd.f32 %v391_v59, %v1504_v55 }
 0x395   : > { %v1287_v61 = vpop.eup %1286  ;;  %v705_v36 = vadd.f32 %v704_v60, %v690_v33 }
 0x396   : > { %v1289_v0 = vpop.eup %1288  ;;  %v691_v4 = vmul.f32 %v1287_v61, %v1468_v43  ;;  %v401_v7 = vpop.permute.xlu1 %400 }
 0x397   : > { %v396_v9 = vpop.permute.xlu0 %395  ;;  %v692_v13 = vmul.f32 %v1289_v0, %v1466_v42  ;;  %v410_v16 = vadd.f32 %v1502_v53, %v401_v7 }
 0x398   : > { %v409_v11 = vadd.f32 %v396_v9, %v1508_v57  ;;  %v706_v15 = vadd.f32 %v705_v36, %v691_v4  ;;  %v1229_v36 = vld [vmem:[%s1592_s3 + $0x8] sm:$0xff]  }
 0x399   : > { %v1291_v40 = vpop.eup %1290 }
 0x39a   : > { %v734_v35 = vpack.c.bf16 %v409_v11, %v408_v63  ;;  %v1293_v17 = vpop.eup %1292  ;;  %v693_v19 = vmul.f32 %v1291_v40, %v1474_v44  ;;  %v707_v21 = vadd.f32 %v706_v15, %v692_v13  ;;  %v406_v55 = vpop.permute.xlu1 %405 }
 0x39b   : > { %v411_v22 = vadd.f32 %v1506_v56, %v406_v55  ;;  %v694_v43 = vmul.f32 %v1293_v17, %v1472_v34 }
 0x39c   : > { %1201 = vmatprep.mubr.bf16.mxu0 %v734_v35  ;;  %v708_v23 = vadd.f32 %v707_v21, %v693_v19 }
 0x39d   : > { %v735_v24 = vpack.c.bf16 %v411_v22, %v410_v16 }
 0x39e   : > { %v709_v57 = vadd.f32 %v708_v23, %v694_v43 }
 0x3a0   : > { %v710_v58 = vrot.slane %v709_v57, 4 }
 0x3a2   : > { %v711_v42 = vadd.f32 %v710_v58, %v709_v57 }
 0x3a4   : > { %v712_v27 = vrot.slane %v711_v42, 2 }
 0x3a6   : > { %v713_v28 = vadd.f32 %v712_v27, %v711_v42 }
 0x3a8   : > { %v714_v6 = vrot.slane %v713_v28, 1 }
 0x3aa   : > { %v715_v53 = vadd.f32 %v714_v6, %v713_v28 }
 0x3ac   : > { %v716_v29 = vadd.f32 1e-09, %v715_v53 }
 0x3ae   : > { %1294 = vrcp.f32 %v716_v29 }
 0x3b8   : > { %v1295_v30 = vpop.eup %1294 }
 0x3b9   : > { %v718_v44 = vmul.f32 %v1295_v30, %v1514_v12  ;;  %v719_v31 = vmul.f32 %v1295_v30, %v1511_v8  ;;  %v720_v56 = vmul.f32 %v1295_v30, %v1519_v18  ;;  %v721_v34 = vmul.f32 %v1295_v30, %v1522_v62 }
 0x3ba   : > { %v722_v32 = vmul.f32 %v1295_v30, %v1526_v54  ;;  %v723_v39 = vmul.f32 %v1295_v30, %v1530_v25  ;;  %v724_v46 = vmul.f32 %v1295_v30, %v1535_v10  ;;  %v725_v12 = vmul.f32 %v1295_v30, %v1538_v38 }
 0x3bb   : > { %v736_v37 = vpack.c.bf16 %v719_v31, %v718_v44  ;;  %v737_v20 = vpack.c.bf16 %v721_v34, %v720_v56  ;;  %v726_v18 = vmul.f32 %v1295_v30, %v1542_v41  ;;  %v727_v62 = vmul.f32 %v1295_v30, %v688_v49  ;;  %v1228_v41 = vld [vmem:[%s1592_s3] sm:$0xff]  }
 0x3bc   : > { %v738_v45 = vpack.c.bf16 %v723_v39, %v722_v32  ;;  %v739_v8 = vpack.c.bf16 %v725_v12, %v724_v46  ;;  %v728_v14 = vmul.f32 %v1295_v30, %v689_v51  ;;  %v729_v54 = vmul.f32 %v1295_v30, %v690_v33  ;;  %1209 = vmatprep.mubr.msk.bf16.mxu1 %vm310_vm0, %v1228_v41 }
 0x3bd   : > { %1185 = vmatprep.subr.bf16.mxu0 %v736_v37  ;;  %v740_v47 = vpack.c.bf16 %v727_v62, %v726_v18  ;;  %v730_v48 = vmul.f32 %v1295_v30, %v691_v4  ;;  %v731_v26 = vmul.f32 %v1295_v30, %v692_v13  ;;  %v732_v38 = vmul.f32 %v1295_v30, %v693_v19 }
 0x3be   : > { %1186 = vmatpush3.bf16.msra.mxu0 %v736_v37  ;;  %v741_v25 = vpack.c.bf16 %v729_v54, %v728_v14  ;;  %v733_v50 = vmul.f32 %v1295_v30, %v694_v43 }
 0x3bf   : > { %1187 = vmatprep.subr.bf16.mxu0 %v737_v20  ;;  %v742_v10 = vpack.c.bf16 %v731_v26, %v730_v48 }
 0x3c0   : > { %v743_v52 = vpack.c.bf16 %v733_v50, %v732_v38 }
 0x3c2   : > { %1188 = vmatpush3.bf16.msra.mxu0 %v737_v20 }
 0x3c3   : > { %1189 = vmatprep.subr.bf16.mxu0 %v738_v45 }
 0x3c6   : > { %1190 = vmatpush3.bf16.msra.mxu0 %v738_v45 }
 0x3c7   : > { %1191 = vmatprep.subr.bf16.mxu0 %v739_v8 }
 0x3ca   : > { %1192 = vmatpush3.bf16.msra.mxu0 %v739_v8 }
 0x3cb   : > { %1193 = vmatprep.subr.bf16.mxu0 %v740_v47 }
 0x3ce   : > { %1194 = vmatpush3.bf16.msra.mxu0 %v740_v47 }
 0x3cf   : > { %1195 = vmatprep.subr.bf16.mxu0 %v741_v25 }
 0x3d2   : > { %1196 = vmatpush3.bf16.msra.mxu0 %v741_v25 }
 0x3d3   : > { %1197 = vmatprep.subr.bf16.mxu0 %v742_v10 }
 0x3d6   : > { %1198 = vmatpush3.bf16.msra.mxu0 %v742_v10 }
 0x3d7   : > { %1199 = vmatprep.subr.bf16.mxu0 %v743_v52 }
 0x3da   : > { %1200 = vmatpush3.bf16.msra.mxu0 %v743_v52 }
 0x3dd   : > { %1202 = vmatmul.mubr.bf16.vlgmr.msra.gmra.mrb[8].mxu0 %v735_v24  ;;  %v928_v24 = vlaneseq }
 0x3df   : > { %v929_v57 = vand.u32 127, %v928_v24  ;;  %v931_v27 = vshrl.u32 %v928_v24, 7 }
 0x3e1   : > { %v934_v58 = vadd.s32 4294967288, %v929_v57  ;;  %v941_v53 = vadd.s32 4294967280, %v929_v57  ;;  %v932_v30 = vsub.s32 %v929_v57, %v931_v27  ;;  %v948_v31 = vadd.s32 4294967272, %v929_v57 }
 0x3e3   : > { %v937_v6 = vsub.s32 %v934_v58, %v931_v27  ;;  %v944_v34 = vsub.s32 %v941_v53, %v931_v27  ;;  %v951_v45 = vsub.s32 %v948_v31, %v931_v27 }
 0x4b0   : > { %v1203_v49 = vpop.f32.mrb[8].mxu0 }
 0x4b1   : > { %v778_v51 = vpop.f32.mrb[9].mxu0  ;;  %v795_v59 = vsub.f32 %v1362_v3, %v1203_v49  ;;  %v802_v3 = vpop.permute.xlu1 %801 }
 0x4b2   : > { %v1204_v33 = vpop.f32.mrb[10].mxu0  ;;  %v793_v63 = vsub.f32 %v1358_v1, %v778_v51 }
 0x4b3   : > { %v796_v60 = vsub.f32 %v1366_v5, %v1204_v33  ;;  %v781_v61 = vpop.f32.mrb[11].mxu0 }
 0x4b4   : > { %v794_v0 = vsub.f32 %v1360_v2, %v781_v61 }
 0x4b5   : > { %v798_v4 = vpack.c.bf16 %v796_v60, %v795_v59  ;;  %v807_v5 = vpop.permute.xlu1 %806 }
 0x4b6   : > { %v797_v7 = vpack.c.bf16 %v794_v0, %v793_v63 }
 0x4b8   : > { %1205 = vmatprep.subr.bf16.mxu1 %v797_v7 }
 0x4b9   : > { %1206 = vmatpush3.bf16.msra.mxu1 %v797_v7  ;;  %v812_v9 = vpop.permute.xlu1 %811 }
 0x4ba   : > { %1207 = vmatprep.subr.bf16.mxu1 %v798_v4 }
 0x4bd   : > { %1208 = vmatpush3.bf16.msra.mxu1 %v798_v4  ;;  %v817_v2 = vpop.permute.xlu1 %816 }
 0x4c0   : > { %1210 = vmatmul.mubr.msk.bf16.vlgmr.msra.gmra.mrb[16].mxu1 %vm310_vm0, %v1229_v36 }
 0x593   : > { %v1211_v11 = vpop.f32.mrb[16].mxu1 }
 0x594   : > { %v878_v1 = vadd.f32 %v1211_v11, %v812_v9  ;;  %v869_v13 = vpop.f32.mrb[17].mxu1 }
 0x595   : > { %v870_v15 = vadd.f32 %v869_v13, %v802_v3  ;;  %v1212_v40 = vpop.f32.mrb[18].mxu1 }
 0x596   : > { %v881_v16 = vadd.f32 %v1212_v40, %v817_v2  ;;  %908 = vadd.xlane.f32.xlu0 %v878_v1  ;;  %v872_v35 = vpop.f32.mrb[19].mxu1  ;;  %v914_v55 = vmul.f32 %v878_v1, %v878_v1 }
 0x597   : > { %v873_v17 = vadd.f32 %v872_v35, %v807_v5  ;;  %904 = vadd.xlane.f32.xlu1 %v870_v15  ;;  %v912_v22 = vmul.f32 %v870_v15, %v870_v15 }
 0x598   : > { %v1120_v19 = vpack.c.bf16 %v881_v16, %v878_v1  ;;  %v915_v23 = vmul.f32 %v881_v16, %v881_v16 }
 0x599   : > { %v1115_v21 = vpack.c.bf16 %v873_v17, %v870_v15  ;;  %v913_v43 = vmul.f32 %v873_v17, %v873_v17 }
 0x59a   : > { %1122 = vst [vmem:[%s258_s12 + $0x8] sm:$0xff] %v1120_v19   ;;  %906 = vadd.xlane.f32.xlu0 %v873_v17 }
 0x59b   : > { %1116 = vst [vmem:[%s258_s12] sm:$0xff] %v1115_v21   ;;  %920 = vadd.xlane.f32.xlu1 %v914_v55 }
 0x59e   : > { %916 = vadd.xlane.f32.xlu0 %v912_v22 }
 0x59f   : > { %918 = vadd.xlane.f32.xlu1 %v913_v43 }
 0x5a2   : > { %910 = vadd.xlane.f32.xlu0 %v881_v16 }
 0x5a3   : > { %922 = vadd.xlane.f32.xlu1 %v915_v23 }
 0x623   : > { %v909_v42 = vpop.xlane.xlu0 %908 }
 0x624   : > { %v905_v28 = vpop.xlane.xlu1 %904  ;;  %v945_v8 = vrot.slane %v909_v42, %v944_v34 }
 0x625   : > { %v933_v20 = vrot.slane %v905_v28, %v932_v30 }
 0x627   : > { %v907_v29 = vpop.xlane.xlu0 %906 }
 0x628   : > { %v921_v44 = vpop.xlane.xlu1 %920  ;;  %v938_v56 = vrot.slane %v907_v29, %v937_v6 }
 0x629   : > { %v972_v47 = vrot.slane %v921_v44, %v944_v34 }
 0x62a   : > { %v940_v12 = vsel %vm939_vm1, %v938_v56, %v933_v20 }
 0x62b   : > { %v917_v37 = vpop.xlane.xlu0 %916  ;;  %v947_v25 = vsel %vm946_vm2, %v945_v8, %v940_v12 }
 0x62c   : > { %v963_v32 = vrot.slane %v917_v37, %v932_v30  ;;  %v919_v39 = vpop.xlane.xlu1 %918 }
 0x62d   : > { %v967_v46 = vrot.slane %v919_v39, %v937_v6 }
 0x62f   : > { %v968_v18 = vsel %vm939_vm1, %v967_v46, %v963_v32  ;;  %v911_v62 = vpop.xlane.xlu0 %910 }
 0x630   : > { %v952_v14 = vrot.slane %v911_v62, %v951_v45  ;;  %v923_v54 = vpop.xlane.xlu1 %922  ;;  %v973_v10 = vsel %vm946_vm2, %v972_v47, %v968_v18 }
 0x631   : > { %v977_v48 = vrot.slane %v923_v54, %v951_v45 }
 0x632   : > { %v954_v26 = vsel %vm953_vm3, %v952_v14, %v947_v25 }
 0x633   : > { %v978_v38 = vsel %vm953_vm3, %v977_v48, %v973_v10 }
 0x634   : > { %v981_v50 = vsel %vm980_vm4, %v954_v26, %v978_v38 }
 0x635   : > { %983 = vst.msk [vmem:[%s262_s16] sm:$0x3] %vm982_vm5, %v981_v50 }
 0x636 PF: > { %s17_s21 = sadd.s32 1, %s1302_s21  }
 0x637   : > { %p14_p4 = scmp.ge.s32.totalorder %s17_s21, 4  }
 0x639   :  { %16 = sbr.rel (!%p14_p4) target bundleno = 1 (0x1), region = 82 }

</bundles_post_ra>
